<compile_context>
chip_gen: v7x
topology: tpu7x:2x2x1
jax: 0.10.0
libtpu: 0.0.40
codegen_flags: <defaults>
</compile_context>

<pallas_src>
import jax
import jax.numpy as jnp
from jax.experimental import pallas as pl
from jax.experimental.pallas import tpu as pltpu

VOCAB_SIZE = 50
EMBED_DIM = 32          # hidden size H == embedding_dim (nn.LSTM(E, E))
CONTEXT_SIZE = 2        # required for the module's view/fct1 shapes to match
NUM_GATES = 4           # PyTorch LSTM gate order: i, f, g, o


def _bilstm_kernel(tok_ref, emb_ref, wrec_ref, head_ref, out_ref):
    E = EMBED_DIM
    H = EMBED_DIM
    H2 = 2 * H                     # fused (fwd|bwd) hidden width
    T = CONTEXT_SIZE

    # --- in-kernel embedding gather (tokens are scalars in SMEM) -----------
    rows = [emb_ref[pl.ds(tok_ref[t], 1), :] for t in range(T)]       # (1, E) each

    # Paired inputs: row t = [x_t | x_{T-1-t}] so a single matmul yields the
    # per-step input contributions for BOTH directions (fwd sees x_t, bwd
    # sees x_{T-1-t} at its own step t).
    x_pair = jnp.concatenate(
        [jnp.concatenate([rows[t], rows[T - 1 - t]], axis=1) for t in range(T)],
        axis=0)                                                        # (T, 2E)

    # --- unpack the fused weight slab (static, sublane-aligned slices) -----
    wih = wrec_ref[0:2 * E, :]                      # (2E, 8H) input proj, both dirs
    whh = wrec_ref[2 * E:2 * E + H2, :]             # (2H, 8H) block-diagonal recurrent
    bias = wrec_ref[2 * E + H2:2 * E + H2 + 1, :]   # (1, 8H)  b_ih + b_hh, both dirs

    # Hoist the input projection off the serial recurrence path.
    xgates = jnp.dot(x_pair, wih, preferred_element_type=jnp.float32) + bias  # (T, 8H)

    def activate(gates):
        # Two full-width EUP passes (EUP has its own bundle slot; cheaper than
        # four lane-narrow slices), then contiguous 64-lane gate slices.
        sg = jax.nn.sigmoid(gates)
        tg = jnp.tanh(gates)
        return (sg[:, 0:H2],            # i = [i_f | i_b]
                sg[:, H2:2 * H2],       # f = [f_f | f_b]
                tg[:, 2 * H2:3 * H2],   # g = [g_f | g_b]
                sg[:, 3 * H2:4 * H2])   # o = [o_f | o_b]

    # --- fused bidirectional recurrence ------------------------------------
    # t = 0: h0 = c0 = 0, so the recurrent matmul and the f*c term vanish.
    i_g, _f_g, g_g, o_g = activate(xgates[0:1, :])
    c = i_g * g_g
    h = o_g * jnp.tanh(c)

    for t in range(1, T):                          # tiny static trip count -> unrolled
        gates = xgates[t:t + 1, :] + jnp.dot(h, whh,
                                             preferred_element_type=jnp.float32)
        i_g, f_g, g_g, o_g = activate(gates)
        c = f_g * c + i_g * g_g
        h = o_g * jnp.tanh(c)

    # h == [h_fwd_final | h_bwd_final] == h_n.view((1, -1)).
    # Fused head: (fct2 ∘ fct1) folded into one matmul + bias (exact).
    head_w = head_ref[0:H2, :]                     # (2H, C)
    head_b = head_ref[H2:H2 + 1, :]                # (1, C)
    out_ref[...] = jnp.dot(h, head_w, preferred_element_type=jnp.float32) + head_b


def pack_params(p):
    """Host-side repack of the module's parameters into 3 fused arrays."""
    H = EMBED_DIM
    E = EMBED_DIM

    def interleave_cols(fwd, bwd):
        # (..., 4H) x2 -> (..., 8H) with per-gate interleaving:
        # [i_f, i_b, f_f, f_b, g_f, g_b, o_f, o_b]
        blocks = []
        for k in range(NUM_GATES):
            blocks.append(fwd[..., k * H:(k + 1) * H])
            blocks.append(bwd[..., k * H:(k + 1) * H])
        return jnp.concatenate(blocks, axis=-1)

    # Input projection: rows 0:E act on x_t (forward dir), rows E:2E act on
    # x_{T-1-t} (backward dir); each only feeds its own direction's columns.
    wih2 = jnp.concatenate(
        [interleave_cols(p["wih_f"], jnp.zeros_like(p["wih_f"])),
         interleave_cols(jnp.zeros_like(p["wih_b"]), p["wih_b"])], axis=0)   # (2E, 8H)

    # Block-diagonal recurrent weight: h_fwd -> fwd gate columns, h_bwd -> bwd.
    whh2 = jnp.concatenate(
        [interleave_cols(p["whh_f"], jnp.zeros_like(p["whh_f"])),
         interleave_cols(jnp.zeros_like(p["whh_b"]), p["whh_b"])], axis=0)   # (2H, 8H)

    bias2 = interleave_cols(p["b_f"], p["b_b"])                              # (1, 8H)

    wrec = jnp.concatenate(
        [wih2, whh2, bias2, jnp.zeros((7, 8 * H), jnp.float32)], axis=0)     # (136, 8H)

    # Fold fct1 and fct2 (no nonlinearity between them in the module).
    head_w = p["w1"] @ p["w2"]                                               # (2H, C)
    head_b = p["b1"] @ p["w2"] + p["b2"]                                     # (1, C)
    head = jnp.concatenate(
        [head_w, head_b, jnp.zeros((7, CONTEXT_SIZE), jnp.float32)], axis=0) # (72, C)

    return dict(embedding=p["embedding"], wrec=wrec, head=head)


def bidirectional_lstm_forward(tokens, packed):
    kernel = pl.pallas_call(
        _bilstm_kernel,
        out_shape=jax.ShapeDtypeStruct((1, CONTEXT_SIZE), jnp.float32),
        in_specs=[
            pl.BlockSpec(memory_space=pltpu.MemorySpace.SMEM),   # tokens
            pl.BlockSpec(memory_space=pltpu.MemorySpace.VMEM),   # embedding table
            pl.BlockSpec(memory_space=pltpu.MemorySpace.VMEM),   # fused recurrent slab
            pl.BlockSpec(memory_space=pltpu.MemorySpace.VMEM),   # fused head
        ],
        out_specs=pl.BlockSpec(memory_space=pltpu.MemorySpace.VMEM),
    )
    return kernel(tokens.astype(jnp.int32), packed["embedding"],
                  packed["wrec"], packed["head"])


def init_params(key):
    """Parameters in the original (per-direction, per-layer) layout."""
    H = EMBED_DIM
    ks = jax.random.split(key, 12)

    def u(k, shape, scale):
        return jax.random.uniform(k, shape, jnp.float32, -scale, scale)

    s_lstm = 1.0 / float(H) ** 0.5
    s_fc1 = 1.0 / float(2 * H) ** 0.5
    s_fc2 = 1.0 / float(12) ** 0.5
    return dict(
        embedding=jax.random.normal(ks[0], (VOCAB_SIZE, EMBED_DIM), jnp.float32),
        wih_f=u(ks[1], (EMBED_DIM, 4 * H), s_lstm),
        whh_f=u(ks[2], (H, 4 * H), s_lstm),
        b_f=u(ks[3], (1, 4 * H), s_lstm),       # b_ih + b_hh folded together
        wih_b=u(ks[4], (EMBED_DIM, 4 * H), s_lstm),
        whh_b=u(ks[5], (H, 4 * H), s_lstm),
        b_b=u(ks[6], (1, 4 * H), s_lstm),
        w1=u(ks[7], (2 * H, 12), s_fc1),
        b1=u(ks[8], (1, 12), s_fc1),
        w2=u(ks[9], (12, CONTEXT_SIZE), s_fc2),
        b2=u(ks[10], (1, CONTEXT_SIZE), s_fc2),
    )


def reference_forward(tokens, p):
    # Pure-JAX reference in the original (unfused) formulation.
    emb = p["embedding"][tokens]
    H = EMBED_DIM

    def run(wih, whh, b, seq):
        h = jnp.zeros((1, H), jnp.float32)
        c = jnp.zeros((1, H), jnp.float32)
        for t in range(seq.shape[0]):
            x_t = seq[t:t + 1]
            g = x_t @ wih + h @ whh + b
            i = jax.nn.sigmoid(g[:, :H])
            f = jax.nn.sigmoid(g[:, H:2 * H])
            gg = jnp.tanh(g[:, 2 * H:3 * H])
            o = jax.nn.sigmoid(g[:, 3 * H:])
            c = f * c + i * gg
            h = o * jnp.tanh(c)
        return h

    h_f = run(p["wih_f"], p["whh_f"], p["b_f"], emb)
    h_b = run(p["wih_b"], p["whh_b"], p["b_b"], emb[::-1])
    feat = jnp.concatenate([h_f, h_b], axis=1)
    return (feat @ p["w1"] + p["b1"]) @ p["w2"] + p["b2"]


if __name__ == "__main__":
    key = jax.random.PRNGKey(0)
    pkey, tkey = jax.random.split(key)
    params = init_params(pkey)
    packed = jax.tree_util.tree_map(jax.block_until_ready, pack_params(params))
    tokens = jax.random.randint(tkey, (CONTEXT_SIZE,), 0, VOCAB_SIZE, dtype=jnp.int32)

    out = bidirectional_lstm_forward(tokens, packed)
    out = jax.block_until_ready(out)

    ref = reference_forward(tokens, params)
    assert out.shape == (1, CONTEXT_SIZE), out.shape
    assert jnp.allclose(out, ref, atol=1e-4, rtol=1e-4), (out, ref)
    print("KERNEL_OK")
</pallas_src>

<mosaic_0001>
module attributes {stable_mosaic.version = 11 : i64} {
  func.func @_bilstm_kernel(%arg0: memref<2xi32, #tpu.memory_space<smem>>, %arg1: memref<50x32xf32, #tpu.memory_space<vmem>>, %arg2: memref<136x256xf32, #tpu.memory_space<vmem>>, %arg3: memref<72x2xf32, #tpu.memory_space<vmem>>, %arg4: memref<1x2xf32, #tpu.memory_space<vmem>>) attributes {dimension_semantics = [], scalar_prefetch = 0 : i64, scratch_operands = 0 : i64, tpu.core_type = #tpu.core_type<tc>} {
    %c0 = arith.constant 0 : index
    %0 = memref.load %arg0[%c0] : memref<2xi32, #tpu.memory_space<smem>>
    %1 = arith.index_cast %0 : i32 to index
    %c0_0 = arith.constant 0 : index
    %2 = vector.load %arg1[%1, %c0_0] : memref<50x32xf32, #tpu.memory_space<vmem>>, vector<1x32xf32>
    %c1 = arith.constant 1 : index
    %3 = memref.load %arg0[%c1] : memref<2xi32, #tpu.memory_space<smem>>
    %4 = arith.index_cast %3 : i32 to index
    %c0_1 = arith.constant 0 : index
    %5 = vector.load %arg1[%4, %c0_1] : memref<50x32xf32, #tpu.memory_space<vmem>>, vector<1x32xf32>
    %6 = tpu.concatenate %2, %5 in 1 : vector<1x32xf32>, vector<1x32xf32> -> vector<1x64xf32>
    %7 = tpu.concatenate %5, %2 in 1 : vector<1x32xf32>, vector<1x32xf32> -> vector<1x64xf32>
    %8 = tpu.concatenate %6, %7 in 0 : vector<1x64xf32>, vector<1x64xf32> -> vector<2x64xf32>
    %c0_2 = arith.constant 0 : index
    %c0_3 = arith.constant 0 : index
    %9 = vector.load %arg2[%c0_2, %c0_3] : memref<136x256xf32, #tpu.memory_space<vmem>>, vector<64x256xf32>
    %c64 = arith.constant 64 : index
    %c0_4 = arith.constant 0 : index
    %10 = vector.load %arg2[%c64, %c0_4] : memref<136x256xf32, #tpu.memory_space<vmem>>, vector<64x256xf32>
    %c128 = arith.constant 128 : index
    %c0_5 = arith.constant 0 : index
    %11 = vector.load %arg2[%c128, %c0_5] : memref<136x256xf32, #tpu.memory_space<vmem>>, vector<1x256xf32>
    %cst = arith.constant dense<0.000000e+00> : vector<2x256xf32>
    %12 = tpu.matmul %8, %9, %cst {dimension_numbers = #tpu.dot_dimension_numbers<[1], [0], [0], [1], [0, 0, 1, 1], [], []>} : vector<2x64xf32>, vector<64x256xf32>, vector<2x256xf32> -> vector<2x256xf32>
    %13 = vector.broadcast %11 : vector<1x256xf32> to vector<2x256xf32>
    %14 = arith.addf %12, %13 : vector<2x256xf32>
    %15 = vector.extract_strided_slice %14 {offsets = [0, 0], sizes = [1, 256], strides = [1, 1]} : vector<2x256xf32> to vector<1x256xf32>
    %16 = arith.negf %15 : vector<1x256xf32>
    %17 = math.exp %16 : vector<1x256xf32>
    %cst_6 = arith.constant 1.000000e+00 : f32
    %18 = vector.broadcast %cst_6 : f32 to vector<1x256xf32>
    %19 = arith.addf %18, %17 : vector<1x256xf32>
    %20 = arith.divf %18, %19 : vector<1x256xf32>
    %21 = math.tanh %15 : vector<1x256xf32>
    %22 = vector.extract_strided_slice %20 {offsets = [0, 0], sizes = [1, 64], strides = [1, 1]} : vector<1x256xf32> to vector<1x64xf32>
    %23 = vector.extract_strided_slice %21 {offsets = [0, 128], sizes = [1, 64], strides = [1, 1]} : vector<1x256xf32> to vector<1x64xf32>
    %24 = vector.extract_strided_slice %20 {offsets = [0, 192], sizes = [1, 64], strides = [1, 1]} : vector<1x256xf32> to vector<1x64xf32>
    %25 = arith.mulf %22, %23 : vector<1x64xf32>
    %26 = math.tanh %25 : vector<1x64xf32>
    %27 = arith.mulf %24, %26 : vector<1x64xf32>
    %28 = vector.extract_strided_slice %14 {offsets = [1, 0], sizes = [1, 256], strides = [1, 1]} : vector<2x256xf32> to vector<1x256xf32>
    %cst_7 = arith.constant dense<0.000000e+00> : vector<1x256xf32>
    %29 = tpu.matmul %27, %10, %cst_7 {dimension_numbers = #tpu.dot_dimension_numbers<[1], [0], [0], [1], [0, 0, 1, 1], [], []>} : vector<1x64xf32>, vector<64x256xf32>, vector<1x256xf32> -> vector<1x256xf32>
    %30 = arith.addf %28, %29 : vector<1x256xf32>
    %31 = arith.negf %30 : vector<1x256xf32>
    %32 = math.exp %31 : vector<1x256xf32>
    %cst_8 = arith.constant 1.000000e+00 : f32
    %33 = vector.broadcast %cst_8 : f32 to vector<1x256xf32>
    %34 = arith.addf %33, %32 : vector<1x256xf32>
    %35 = arith.divf %33, %34 : vector<1x256xf32>
    %36 = math.tanh %30 : vector<1x256xf32>
    %37 = vector.extract_strided_slice %35 {offsets = [0, 0], sizes = [1, 64], strides = [1, 1]} : vector<1x256xf32> to vector<1x64xf32>
    %38 = vector.extract_strided_slice %35 {offsets = [0, 64], sizes = [1, 64], strides = [1, 1]} : vector<1x256xf32> to vector<1x64xf32>
    %39 = vector.extract_strided_slice %36 {offsets = [0, 128], sizes = [1, 64], strides = [1, 1]} : vector<1x256xf32> to vector<1x64xf32>
    %40 = vector.extract_strided_slice %35 {offsets = [0, 192], sizes = [1, 64], strides = [1, 1]} : vector<1x256xf32> to vector<1x64xf32>
    %41 = arith.mulf %38, %25 : vector<1x64xf32>
    %42 = arith.mulf %37, %39 : vector<1x64xf32>
    %43 = arith.addf %41, %42 : vector<1x64xf32>
    %44 = math.tanh %43 : vector<1x64xf32>
    %45 = arith.mulf %40, %44 : vector<1x64xf32>
    %c0_9 = arith.constant 0 : index
    %c0_10 = arith.constant 0 : index
    %46 = vector.load %arg3[%c0_9, %c0_10] : memref<72x2xf32, #tpu.memory_space<vmem>>, vector<64x2xf32>
    %c64_11 = arith.constant 64 : index
    %c0_12 = arith.constant 0 : index
    %47 = vector.load %arg3[%c64_11, %c0_12] : memref<72x2xf32, #tpu.memory_space<vmem>>, vector<1x2xf32>
    %cst_13 = arith.constant dense<0.000000e+00> : vector<1x2xf32>
    %48 = tpu.matmul %45, %46, %cst_13 {dimension_numbers = #tpu.dot_dimension_numbers<[1], [0], [0], [1], [0, 0, 1, 1], [], []>} : vector<1x64xf32>, vector<64x2xf32>, vector<1x2xf32> -> vector<1x2xf32>
    %49 = arith.addf %48, %47 : vector<1x2xf32>
    %c0_14 = arith.constant 0 : index
    %c0_15 = arith.constant 0 : index
    %50 = vector.load %arg4[%c0_14, %c0_15] : memref<1x2xf32, #tpu.memory_space<vmem>>, vector<1x2xf32>
    tpu.vector_store %arg4[%c0_14, %c0_15], %49 {strides = array<i32>} : memref<1x2xf32, #tpu.memory_space<vmem>>, vector<1x2xf32>,
    return
  }
}

</mosaic_0001>

<bundles_post_ra>
// kernel: tpu_custom_call.1
= control target key start
LH: loop header
LB: loop body
LE: loop exit
PB: predicated region body
PF: predicated region fallthrough
CT: control target
= control target key end

     0   :  { %9 = vsyncpa [#allocation5], 0  ;;  %s717_s0 = inlined_call_operand.vmem [shape: s32[2], index: 0, kind: input, shape index: {}]   ;;  %s718_s1 = inlined_call_operand.vmem [shape: f32[50,32], index: 1, kind: input, shape index: {}]   ;;  %s719_s2 = inlined_call_operand.hbm [shape: f32[136,256], index: 2, kind: input, shape index: {}]   ;;  %s720_s3 = inlined_call_operand.vmem [shape: f32[72,2], index: 3, kind: input, shape index: {}]   ;;  %s721_s4 = inlined_call_operand.hbm [shape: f32[1,2], index: 4, kind: output, shape index: {}]  }
   0x1   :  { %10 = vsyncpa [#allocation3], 0 }
   0x2   :  { %11 = vsyncpa [#allocation4], 0  ;;  %s18_s17 = sshll.u32 %s717_s0, 4  ;;  %s19_s17 = int_to_ptr.vmem [resolvable:$true] %s18_s17 }
   0x3   :  { %s537_s18 = scalar_lea.vmem %s19_s17, 16  ;;  %p542_p1 = scmp.lt.s32.totalorder %s19_s17, %s19_s17 }
   0x4   :  { %p538_p0 = scmp.ne.s32.totalorder %s19_s17, %s537_s18  ;;  %p543_p2 = scmp.lt.s32.totalorder %s537_s18, %s537_s18 }
   0x6   :  { %p544_p3 = por %p543_p2, %p542_p1 }
   0x8   :  { %p545_p4 = pnand %p544_p3, %p538_p0 }
   0xa   :  { %548 = shalt.err (!%p545_p4)
}
   0xb   :  { %s599_s19 = smov [#allocation2]   ;;  %s600_s20 = smov [#allocation6]  }
   0xc   :  { %21 = dma.vmem_to_smem %s19_s17, 16, %s599_s19, [#allocation5]  }
   0xd   :  { %s29_s21 = sshll.u32 %s600_s20, 4  ;;  %s549_s24 = scalar_lea.hbm %s719_s2, 4352  ;;  %s30_s21 = int_to_ptr.vmem [resolvable:$true] %s29_s21 }
   0xe   :  { %p550_p5 = scmp.ne.s32.totalorder %s719_s2, %s549_s24  ;;  %p553_p6 = scmp.lt.u32.totalorder %s549_s24, %s719_s2 }
  0x10   :  { %p555_p7 = pnand %p553_p6, %p550_p5 }
  0x12   :  { %558 = shalt.err (!%p555_p7)
}
  0x13   :  { %s559_s28 = scalar_lea.vmem %s30_s21, 4352  ;;  %p564_p9 = scmp.lt.s32.totalorder %s30_s21, %s30_s21 }
  0x14   :  { %p560_p8 = scmp.ne.s32.totalorder %s30_s21, %s559_s28  ;;  %p565_p10 = scmp.lt.s32.totalorder %s559_s28, %s559_s28 }
  0x16   :  { %p566_p11 = por %p565_p10, %p564_p9 }
  0x18   :  { %p567_p12 = pnand %p566_p11, %p560_p8 }
  0x1a   :  { %570 = shalt.err (!%p567_p12)
}
  0x1b   :  { %s601_s29 = smov 256   ;;  %s602_s30 = smov 16  }
  0x1c   :  { %35 = dma.hbm_to_vmem [thread:$0]  %s719_s2, 4352, %s30_s21, [#allocation3], %s601_s29, %s601_s29, %s602_s30  }
  0x1d   :  { %593 = dma.done.wait [#allocation5], 16  }
  0x1e   :  { %594 = vsyncadd [#allocation5], 4294967280 }
  0x1f   :  { %595 = dma.done.wait [#allocation3], 4352  }
  0x20   :  { %596 = vsyncadd [#allocation3], 4294962944 }
  0x21   :  { %44 = sfence }
  0x22   :  { %s45_s7 = sld [smem:[#allocation2]]  ;;  %v68_v0 = vld [vmem:[#allocation6 + $0x8] sm:$0xff]  ;;  %v70_v1 = vld [vmem:[#allocation6 + $0x18] sm:$0xff]  ;;  %v67_v2 = vld [vmem:[#allocation6] sm:$0xff]  ;;  %s649_s8 = sld [smem:[#allocation2 + $0x1]]  ;;  %v603_v13 = vmov 0.0   ;;  %v102_v33 = vlaneseq }
  0x23   :  { %v459_v3 = vpack.c.bf16 %v70_v1, %v68_v0  ;;  %v69_v4 = vld [vmem:[#allocation6 + $0x10] sm:$0xff]  ;;  %v72_v5 = vld [vmem:[#allocation6 + $0x28] sm:$0xff]  ;;  %v74_v6 = vld [vmem:[#allocation6 + $0x38] sm:$0xff]  ;;  %180 = vmatprep.mubr.f32.mxu0 %v603_v13  ;;  %276 = vmatprep.mubr.f32.mxu1 %v603_v13  ;;  %s604_s14 = smov 32   ;;  %vm55_vm0 = vcmask 261120   ;;  %vm65_vm1 = vcmask 1040384  }
  0x24   :  { %v461_v7 = vpack.c.bf16 %v69_v4, %v67_v2  ;;  %v463_v8 = vpack.c.bf16 %v74_v6, %v72_v5  ;;  %v71_v9 = vld [vmem:[#allocation6 + $0x20] sm:$0xff]  ;;  %v73_v10 = vld [vmem:[#allocation6 + $0x30] sm:$0xff]  ;;  %v76_v11 = vld [vmem:[#allocation6 + $0x48] sm:$0xff]  ;;  %vm112_vm2 = vcmask 523264   ;;  %v103_v34 = vshrl.u32 %v102_v33, 7  ;;  %s608_s6 = smov [#allocation7]  }
  0x25   :  { %460 = vmatprep.subr.bf16.mxu0 %v459_v3  ;;  %v78_v12 = vld [vmem:[#allocation6 + $0x58] sm:$0xff]  ;;  %v465_v14 = vpack.c.bf16 %v73_v10, %v71_v9  ;;  %v75_v16 = vld [vmem:[#allocation6 + $0x40] sm:$0xff]  ;;  %v77_v17 = vld [vmem:[#allocation6 + $0x50] sm:$0xff]  ;;  %vm607_vm3 = vmmov 0   ;;  %vm403_vm4 = vcmask 8192  }
  0x26   :  { %462 = vmatpush1.bf16.msra.mxu0 %v461_v7  ;;  %v467_v15 = vpack.c.bf16 %v78_v12, %v76_v11  ;;  %v80_v18 = vld [vmem:[#allocation6 + $0x68] sm:$0xff]  ;;  %v82_v19 = vld [vmem:[#allocation6 + $0x78] sm:$0xff]  ;;  %v469_v21 = vpack.c.bf16 %v77_v17, %v75_v16  ;;  %v79_v24 = vld [vmem:[#allocation6 + $0x60] sm:$0xff]  ;;  %v104_v35 = vsub.s32 0, %v103_v34  ;;  %v108_v42 = vsub.s32 1, %v103_v34 }
  0x27   :  { %464 = vmatprep.subr.bf16.mxu0 %v463_v8  ;;  %v471_v23 = vpack.c.bf16 %v82_v19, %v80_v18  ;;  %v81_v25 = vld [vmem:[#allocation6 + $0x70] sm:$0xff]  ;;  %v100_v36 = vld [vmem:[#allocation6 + $0x100] ss:$8 sm:$0x3]  ;;  %v86_v52 = vld [vmem:[#allocation6 + $0x98] sm:$0xff] }
  0x28   :  { %s46_s10 = scalar_lea.vmem %s718_s1, %s45_s7  ;;  %s49_s13 = scalar_lea.vmem %s718_s1, %s649_s8  ;;  %v473_v26 = vpack.c.bf16 %v81_v25, %v79_v24  ;;  %v105_v37 = vrot.slane %v100_v36, %v104_v35  ;;  %v109_v43 = vrot.slane %v100_v36, %v108_v42  ;;  %v84_v51 = vld [vmem:[#allocation6 + $0x88] sm:$0xff]  ;;  %v83_v53 = vld [vmem:[#allocation6 + $0x80] sm:$0xff]  ;;  %v85_v55 = vld [vmem:[#allocation6 + $0x90] sm:$0xff]  ;;  %v606_v35 = vmov 0.0|0.0  }
  0x29   :  { %v47_v20 = vld [vmem:[%s46_s10] sm:$0x1]  ;;  %v475_v54 = vpack.c.bf16 %v86_v52, %v84_v51  ;;  %v88_v56 = vld [vmem:[#allocation6 + $0xa8] sm:$0xff]  ;;  %v90_v57 = vld [vmem:[#allocation6 + $0xb8] sm:$0xff]  ;;  %s605_s1 = smov 64   ;;  %v477_v58 = vpack.c.bf16 %v85_v55, %v83_v53  ;;  %s411_s7 = sshll.u32 %s608_s6, 4  ;;  %s412_s7 = int_to_ptr.vmem [resolvable:$true] %s411_s7 }
  0x2a   :  { %58 = vrot.lane.b32.xlu0 %v47_v20, %s604_s14  ;;  %466 = vmatpush1.bf16.msra.mxu0 %v465_v14  ;;  %v50_v22 = vld [vmem:[%s49_s13] sm:$0x1]  ;;  %v479_v59 = vpack.c.bf16 %v90_v57, %v88_v56  ;;  %v89_v61 = vld [vmem:[#allocation6 + $0xb0] sm:$0xff]  ;;  %v92_v62 = vld [vmem:[#allocation6 + $0xc8] sm:$0xff]  ;;  %s571_s8 = scalar_lea.vmem %s412_s7, 16  ;;  %s575_s2 = scalar_lea.vmem %s412_s7, 32 }
  0x2b   :  { %468 = vmatprep.subr.bf16.mxu0 %v467_v15  ;;  %v87_v60 = vld [vmem:[#allocation6 + $0xa0] sm:$0xff]  ;;  %476 = vmatprep.subr.bf16.mxu1 %v475_v54  ;;  %v94_v63 = vld [vmem:[#allocation6 + $0xd8] sm:$0xff]  ;;  %v93_v3 = vld [vmem:[#allocation6 + $0xd0] sm:$0xff]  ;;  %p572_p13 = scmp.ne.s32.totalorder %s412_s7, %s571_s8  ;;  %p576_p0 = scmp.lt.s32.totalorder %s412_s7, %s412_s7 }
  0x2c   :  { %478 = vmatpush1.bf16.msra.mxu1 %v477_v58  ;;  %v481_v0 = vpack.c.bf16 %v89_v61, %v87_v60  ;;  %v483_v1 = vpack.c.bf16 %v94_v63, %v92_v62  ;;  %v91_v2 = vld [vmem:[#allocation6 + $0xc0] sm:$0xff]  ;;  %v96_v4 = vld [vmem:[#allocation6 + $0xe8] sm:$0xff]  ;;  %v98_v5 = vld [vmem:[#allocation6 + $0xf8] sm:$0xff]  ;;  %p577_p1 = scmp.lt.s32.totalorder %s575_s2, %s571_s8 }
  0x2d   :  { %480 = vmatprep.subr.bf16.mxu1 %v479_v59  ;;  %v485_v6 = vpack.c.bf16 %v93_v3, %v91_v2  ;;  %v487_v7 = vpack.c.bf16 %v98_v5, %v96_v4  ;;  %v95_v8 = vld [vmem:[#allocation6 + $0xe0] sm:$0xff]  ;;  %v97_v9 = vld [vmem:[#allocation6 + $0xf0] sm:$0xff]  ;;  %v319_v33 = vld [vmem:[%s720_s3 + $0x8] sm:$0xff] }
  0x2e   :  { %52 = vrot.lane.b32.xlu0 %v50_v22, %s604_s14  ;;  %470 = vmatpush1.bf16.msra.mxu0 %v469_v21  ;;  %v489_v11 = vpack.c.bf16 %v97_v9, %v95_v8  ;;  %v320_v34 = vld [vmem:[%s720_s3 + $0x10] sm:$0xff]  ;;  %v326_v56 = vld [vmem:[%s720_s3 + $0x40] sm:$0x1]  ;;  %p578_p2 = por %p577_p1, %p576_p0 }
  0x2f   :  { %472 = vmatprep.subr.bf16.mxu0 %v471_v23  ;;  %v324_v42 = vld [vmem:[%s720_s3 + $0x30] sm:$0xff] }
  0x30   :  { %482 = vmatpush1.bf16.msra.mxu1 %v481_v0  ;;  %p579_p3 = pnand %p578_p2, %p572_p13 }
  0x31   :  { %484 = vmatprep.subr.bf16.mxu1 %v483_v1 }
  0x32   :  { %474 = vmatpush1.bf16.msra.mxu0 %v473_v26 }
  0x33   :  { %491 = vmatprep.subr.bf16.mxu0 %v606_v35 }
  0x34   :  { %486 = vmatpush1.bf16.msra.mxu1 %v485_v6 }
  0x35   :  { %488 = vmatprep.subr.bf16.mxu1 %v487_v7 }
  0x38   :  { %490 = vmatpush1.bf16.msra.mxu1 %v489_v11 }
  0x9c   :  { %v59_v27 = vpop.permute.xlu0 %58 }
  0x9d   :  { %v61_v28 = vsel %vm55_vm0, %v50_v22, %v59_v27 }
  0x9e   :  { %v63_v29 = vrot.slane %v61_v28, 7 }
  0xa0   :  { %v53_v30 = vpop.permute.xlu0 %52 }
  0xa1   :  { %v56_v31 = vsel %vm55_vm0, %v47_v20, %v53_v30 }
  0xa2   :  { %v66_v32 = vsel %vm65_vm1, %v56_v31, %v63_v29 }
  0xa3   :  { %424 = vmatmul.mubr.msk.f32.vlgmr.msra.gmra.mrb[0].mxu0 %vm112_vm2, %v66_v32  ;;  %v318_v32 = vld [vmem:[%s720_s3] sm:$0xff] }
  0xa4   :  { %v492_v36 = vpack.c.bf16 %v319_v33, %v318_v32  ;;  %456 = vmatprep.mubr.msk.f32.mxu0 %vm607_vm3, %v603_v13  ;;  %v325_v13 = vld [vmem:[%s720_s3 + $0x38] sm:$0xff] }
  0xa6   :  { %493 = vmatpush3.bf16.msra.mxu0 %v492_v36 }
  0xa7   :  { %494 = vmatprep.subr.bf16.mxu0 %v606_v35 }
 0x176   :  { %v182_v38 = vpop.f32.mrb[0].mxu0 }
 0x177   :  { %v661_v39 = vadd.f32 %v182_v38, %v105_v37  ;;  %v184_v40 = vpop.f32.mrb[1].mxu0  ;;  %v321_v37 = vld [vmem:[%s720_s3 + $0x18] sm:$0xff] }
 0x178   :  { %v664_v44 = vadd.f32 %v184_v40, %v109_v43  ;;  %v495_v38 = vpack.c.bf16 %v321_v37, %v320_v34  ;;  %v323_v40 = vld [vmem:[%s720_s3 + $0x28] sm:$0xff]  ;;  %v501_v43 = vpack.c.bf16 %v325_v13, %v324_v42 }
 0x179   :  { %v425_v41 = vmul.f32 -1.442695, %v661_v39 }
 0x17a   :  { %v426_v12 = vmul.f32 -1.442695, %v664_v44  ;;  %496 = vmatpush3.bf16.msra.mxu0 %v495_v38 }
 0x17b   :  { %513 = vpow2.f32 %v425_v41  ;;  %497 = vmatprep.subr.bf16.mxu0 %v606_v35 }
 0x17c   :  { %515 = vtanh.f32 %v664_v44 }
 0x185   :  { %v514_v45 = vpop.eup %513 }
 0x186   :  { %v193_v46 = vadd.f32 1.0, %v514_v45  ;;  %v516_v47 = vpop.eup %515 }
 0x188   :  { %517 = vrcp.f32 %v193_v46 }
 0x192   :  { %v518_v48 = vpop.eup %517 }
 0x193   :  { %v200_v49 = vmul.f32 %v518_v48, %v516_v47 }
 0x195   :  { %v305_v50 = vrot.slane %v200_v49, 7  ;;  %519 = vtanh.f32 %v200_v49 }
 0x196   :  { %521 = vpow2.f32 %v426_v12 }
 0x197   :  { %306 = vrot.lane.b32.xlu0 %v305_v50, %s605_s1 }
 0x19f   :  { %v520_v10 = vpop.eup %519 }
 0x1a0   :  { %203 = vrot.lane.b32.xlu1 %v520_v10, %s605_s1  ;;  %v522_v14 = vpop.eup %521 }
 0x1a1   :  { %v194_v15 = vadd.f32 1.0, %v522_v14 }
 0x1a3   :  { %523 = vrcp.f32 %v194_v15 }
 0x1ad   :  { %v524_v16 = vpop.eup %523 }
 0x209   :  { %v307_v46 = vpop.permute.xlu0 %306 }
 0x212   :  { %v204_v17 = vpop.permute.xlu1 %203 }
 0x213   :  { %v206_v18 = vmul.f32 %v524_v16, %v204_v17 }
 0x215   :  { %208 = vrot.lane.b32.xlu1 %v206_v18, %s605_s1 }
 0x287   :  { %v209_v19 = vpop.permute.xlu1 %208 }
 0x288   :  { %427 = vmatmul.mubr.msk.f32.vlgmr.msra.gmra.mrb[0].mxu1 %vm112_vm2, %v209_v19 }
 0x35b   :  { %v278_v20 = vpop.f32.mrb[0].mxu1 }
 0x35c   :  { %v285_v21 = vrot.slane %v278_v20, 7  ;;  %v280_v22 = vpop.f32.mrb[1].mxu1 }
 0x35d   :  { %v286_v25 = vrot.slane %v280_v22, 7 }
 0x35e   :  { %v289_v23 = vadd.f32 %v285_v21, %v661_v39  ;;  %v322_v39 = vld [vmem:[%s720_s3 + $0x20] sm:$0xff] }
 0x35f   :  { %v290_v26 = vadd.f32 %v286_v25, %v664_v44  ;;  %v498_v41 = vpack.c.bf16 %v323_v40, %v322_v39 }
 0x360   :  { %v428_v24 = vmul.f32 -1.442695, %v289_v23 }
 0x361   :  { %499 = vmatpush3.bf16.msra.mxu0 %v498_v41  ;;  %v429_v44 = vmul.f32 -1.442695, %v290_v26 }
 0x362   :  { %525 = vpow2.f32 %v428_v24  ;;  %500 = vmatprep.subr.bf16.mxu0 %v606_v35 }
 0x363   :  { %527 = vtanh.f32 %v290_v26 }
 0x365   :  { %502 = vmatpush3.bf16.msra.mxu0 %v501_v43 }
 0x36c   :  { %v526_v27 = vpop.eup %525 }
 0x36d   :  { %v297_v28 = vadd.f32 1.0, %v526_v27  ;;  %v528_v29 = vpop.eup %527 }
 0x36f   :  { %529 = vrcp.f32 %v297_v28 }
 0x370   :  { %531 = vpow2.f32 %v429_v44 }
 0x379   :  { %v530_v30 = vpop.eup %529 }
 0x37a   :  { %v310_v31 = vmul.f32 %v530_v30, %v528_v29  ;;  %v532_v45 = vpop.eup %531  ;;  %v309_v48 = vmul.f32 %v530_v30, %v307_v46 }
 0x37b   :  { %v298_v47 = vadd.f32 1.0, %v532_v45 }
 0x37c   :  { %312 = vrot.lane.b32.xlu1 %v310_v31, %s605_s1 }
 0x37d   :  { %533 = vrcp.f32 %v298_v47 }
 0x387   :  { %v534_v51 = vpop.eup %533 }
 0x3ee   :  { %v313_v49 = vpop.permute.xlu1 %312 }
 0x3ef   :  { %v315_v50 = vadd.f32 %v313_v49, %v309_v48 }
 0x3f1   :  { %535 = vtanh.f32 %v315_v50 }
 0x3fb   :  { %v536_v52 = vpop.eup %535 }
 0x3fc   :  { %v317_v53 = vmul.f32 %v536_v52, %v534_v51 }
 0x3fe   :  { %v328_v54 = vrot.slane %v317_v53, 1 }
 0x400   :  { %329 = vrot.lane.b32.xlu0 %v328_v54, %s605_s1 }
 0x472   :  { %v330_v55 = vpop.permute.xlu0 %329 }
 0x473   :  { %457 = vmatmul.mubr.msk.f32.vlgmr.msra.gmra.mrb[2].mxu0 %vm112_vm2, %v330_v55 }
 0x546   :  { %v399_v57 = vpop.f32.mrb[2].mxu0 }
 0x547   :  { %v400_v58 = vadd.f32 %v399_v57, %v326_v56  ;;  %v458_v59 = vpop.f32.mrb[3].mxu0 }
 0x549   :  { %404 = vst.msk [vmem:[#allocation7] sm:$0x1] %vm403_vm4, %v400_v58 }
 0x54a   :  { %582 = shalt.err (!%p579_p3)
}
 0x54b   :  { %s583_s3 = scalar_lea.hbm %s721_s4, 16 }
 0x54c   :  { %p584_p4 = scmp.ne.s32.totalorder %s721_s4, %s583_s3  ;;  %p587_p5 = scmp.lt.u32.totalorder %s583_s3, %s721_s4 }
 0x54e   :  { %p589_p6 = pnand %p587_p5, %p584_p4 }
 0x550   :  { %592 = shalt.err (!%p589_p6)
}
 0x551   :  { %414 = dma.vmem_to_hbm [thread:$0]  %s412_s7, 16, %s721_s4, [#allocation4]  }
 0x552   :  { %597 = dma.done.wait [#allocation4], 16  }
 0x553   :  { %598 = vsyncadd [#allocation4], 4294967280 }
 0x554   :  { %418 = vsyncpa [#allocation3], 1 }
 0x555   :  { %419 = vsyncpa [#allocation4], 1 }
 0x556   :  { %420 = vsyncpa [#allocation5], 1 }

</bundles_post_ra>
